<compile_context>
chip_gen: v7x
topology: tpu7x:2x2x1
jax: 0.10.0
libtpu: 0.0.40
codegen_flags: <defaults>
</compile_context>

<pallas_src>
import jax
import jax.numpy as jnp
from jax.experimental import pallas as pl
from jax.experimental.pallas import tpu as pltpu


BN_EPS = 1e-5


# -----------------------------------------------------------------------------
# Kernel: h = ReLU(state @ W1s + ls @ W1l + b1_folded);  q = sum(h * w2_row) + b2
# BatchNorm is pre-folded into W1/b1 on the host, so the kernel is the minimal
# matmul -> bias -> ReLU -> lane-reduce schedule. Output is lane-dense (1, TB).
# -----------------------------------------------------------------------------
def hac_critic_kernel(s_ref, l_ref, w1s_ref, w1l_ref, b1_ref, w2_ref, b2_ref, q_ref):
    # Two MXU matmuls (split of the concatenated input), f32 accumulation.
    h = jnp.dot(s_ref[...], w1s_ref[...], preferred_element_type=jnp.float32)
    h = h + jnp.dot(l_ref[...], w1l_ref[...], preferred_element_type=jnp.float32)
    # Bias (BN already folded in) + ReLU on the VPU.
    h = jnp.maximum(h + b1_ref[...], 0.0)                      # (TB, H) f32
    # Output layer (out_dim == 1): VPU multiply + XLU lane reduction; b2 scalar from SMEM.
    q = jnp.sum(h * w2_ref[...], axis=-1)                      # (TB,)
    q_ref[...] = q[None, :] + b2_ref[0, 0]                     # lane-dense (1, TB) store


# -----------------------------------------------------------------------------
# Host-side parameter preparation (do once per parameter update and cache).
# -----------------------------------------------------------------------------
def prepare_kernel_params(params, state_dim, *, eps=BN_EPS, use_bf16=False):
    """Fold eval-mode BatchNorm into the first Linear and split W1 for the concat-free kernel."""
    (w1, b1, gamma, beta, run_mean, run_var, w2, b2) = params
    scale = gamma * jax.lax.rsqrt(run_var + eps)                # (1, H)
    w1f = w1 * scale                                            # (Din, H)
    b1f = (b1 - run_mean) * scale + beta                        # (1, H), stays f32
    w1s, w1l = w1f[:state_dim], w1f[state_dim:]
    if use_bf16:                                                # bf16 MXU inputs, f32 accumulate
        w1s = w1s.astype(jnp.bfloat16)
        w1l = w1l.astype(jnp.bfloat16)
    w2_row = w2.reshape(1, -1).astype(jnp.float32)              # (1, H) for VPU multiply
    b2_s = b2.reshape(1, 1).astype(jnp.float32)                 # scalar -> SMEM
    return w1s, w1l, b1f, w2_row, b2_s


def compute_regularization(params):
    """sum of mean(p^2) over learnable parameters (W1, b1, gamma, beta, W2, b2).

    Input-invariant -> computed in plain JAX outside the Pallas kernel.
    """
    (w1, b1, gamma, beta, _rm, _rv, w2, b2) = params
    return (jnp.mean(w1 * w1) + jnp.mean(b1 * b1)
            + jnp.mean(gamma * gamma) + jnp.mean(beta * beta)
            + jnp.mean(w2 * w2) + jnp.mean(b2 * b2))


# -----------------------------------------------------------------------------
# Forward wrapper
# -----------------------------------------------------------------------------
def hac_critic_forward(state_emb, list_emb, params, *, batch_tile=128, use_bf16=False):
    """state_emb: (B, state_dim) f32; list_emb: (B, ls_size, f_dim) f32."""
    B, state_dim = state_emb.shape
    ls_flat = list_emb.reshape(B, -1)                           # torch.flatten(start_dim=1)

    w1s, w1l, b1f, w2_row, b2_s = prepare_kernel_params(
        params, state_dim, use_bf16=use_bf16)
    reg = compute_regularization(params)

    if use_bf16:
        state_in = state_emb.astype(jnp.bfloat16)
        ls_in = ls_flat.astype(jnp.bfloat16)
    else:
        state_in = state_emb
        ls_in = ls_flat

    # Batch tiling: one tile if B <= batch_tile (block == full array, so any B is legal);
    # otherwise 128-row tiles (pad B up to a multiple so blocks satisfy the (8,128) rule).
    TB = batch_tile if B > batch_tile else B
    Bp = pl.cdiv(B, TB) * TB
    if Bp != B:
        pad = Bp - B
        state_in = jnp.pad(state_in, ((0, pad), (0, 0)))
        ls_in = jnp.pad(ls_in, ((0, pad), (0, 0)))

    Ds = state_in.shape[1]
    Dl = ls_in.shape[1]
    H = b1f.shape[1]
    grid = (Bp // TB,)

    q = pl.pallas_call(
        hac_critic_kernel,
        out_shape=jax.ShapeDtypeStruct((1, Bp), jnp.float32),   # lane-dense Q slab
        grid_spec=pltpu.PrefetchScalarGridSpec(
            num_scalar_prefetch=0,
            grid=grid,
            in_specs=[
                pl.BlockSpec((TB, Ds), lambda i: (i, 0)),       # state tile (pipelined)
                pl.BlockSpec((TB, Dl), lambda i: (i, 0)),       # flattened list tile (pipelined)
                pl.BlockSpec((Ds, H), lambda i: (0, 0)),        # W1 (state part), resident
                pl.BlockSpec((Dl, H), lambda i: (0, 0)),        # W1 (list part), resident
                pl.BlockSpec((1, H), lambda i: (0, 0)),         # folded bias (BN absorbed)
                pl.BlockSpec((1, H), lambda i: (0, 0)),         # W2 as a row vector
                pl.BlockSpec(memory_space=pltpu.MemorySpace.SMEM),  # b2 scalar
            ],
            out_specs=pl.BlockSpec((1, TB), lambda i: (0, i)),
        ),
        compiler_params=pltpu.CompilerParams(
            dimension_semantics=("parallel",),                  # shard batch tiles across TCs (v7x)
        ),
    )(state_in, ls_in, w1s, w1l, b1f, w2_row, b2_s)

    return {'q': q.reshape(-1)[:B], 'reg': reg}


# -----------------------------------------------------------------------------
# Parameter init mirroring nn.Linear / nn.BatchNorm1d shapes (deterministic).
# -----------------------------------------------------------------------------
def init_params(key, in_dim, hidden_dim):
    k1, k2, k3, k4 = jax.random.split(key, 4)
    lim1 = 1.0 / jnp.sqrt(in_dim)
    lim2 = 1.0 / jnp.sqrt(hidden_dim)
    w1 = jax.random.uniform(k1, (in_dim, hidden_dim), jnp.float32, -lim1, lim1)
    b1 = jax.random.uniform(k2, (1, hidden_dim), jnp.float32, -lim1, lim1)
    gamma = jnp.ones((1, hidden_dim), jnp.float32)
    beta = jnp.zeros((1, hidden_dim), jnp.float32)
    run_mean = jnp.zeros((1, hidden_dim), jnp.float32)
    run_var = jnp.ones((1, hidden_dim), jnp.float32)
    w2 = jax.random.uniform(k3, (hidden_dim, 1), jnp.float32, -lim2, lim2)
    b2 = jax.random.uniform(k4, (1, 1), jnp.float32, -lim2, lim2)
    return (w1, b1, gamma, beta, run_mean, run_var, w2, b2)


if __name__ == "__main__":
    # Shapes consistent with the module defaults:
    #   state_dim=16, f_dim=8, critic_slate_size=6 -> net input dim = 16 + 8*6 = 64
    #   critic_hidden_dims=[256], output dim = 1
    B, state_dim, f_dim, ls_size, hidden_dim = 8, 16, 8, 6, 256
    in_dim = state_dim + f_dim * ls_size

    key = jax.random.PRNGKey(0)
    k_state, k_list, k_params = jax.random.split(key, 3)

    state_emb = jax.random.normal(k_state, (B, state_dim), jnp.float32)
    list_emb = jax.random.normal(k_list, (B, ls_size, f_dim), jnp.float32)
    params = init_params(k_params, in_dim, hidden_dim)

    out = jax.jit(hac_critic_forward)(state_emb, list_emb, params)
    jax.block_until_ready(out)

    # Plain-JAX reference for a correctness sanity check (eval-mode BN, no dropout).
    (w1, b1, gamma, beta, rm, rv, w2, b2) = params
    x = jnp.concatenate([state_emb, list_emb.reshape(B, -1)], axis=-1)
    h = x @ w1 + b1
    h = (h - rm) * gamma * jax.lax.rsqrt(rv + BN_EPS) + beta
    h = jnp.maximum(h, 0.0)
    q_ref = (h @ w2 + b2).reshape(-1)
    assert out['q'].shape == (B,)
    assert out['reg'].shape == ()
    assert jnp.allclose(out['q'], q_ref, atol=1e-4, rtol=1e-4)
    print("KERNEL_OK")
</pallas_src>

<mosaic_0001>
module attributes {stable_mosaic.version = 11 : i64} {
  func.func @hac_critic_kernel(%arg0: i32, %arg1: memref<8x16xf32, #tpu.memory_space<vmem>>, %arg2: memref<8x48xf32, #tpu.memory_space<vmem>>, %arg3: memref<16x256xf32, #tpu.memory_space<vmem>>, %arg4: memref<48x256xf32, #tpu.memory_space<vmem>>, %arg5: memref<1x256xf32, #tpu.memory_space<vmem>>, %arg6: memref<1x256xf32, #tpu.memory_space<vmem>>, %arg7: memref<1x1xf32, #tpu.memory_space<smem>>, %arg8: memref<1x8xf32, #tpu.memory_space<vmem>>) attributes {dimension_semantics = [#tpu.dimension_semantics<parallel>], iteration_bounds = array<i64: 1>, scalar_prefetch = 0 : i64, scratch_operands = 0 : i64, tpu.core_type = #tpu.core_type<tc>, window_params = [{transform_indices = @transform_0, window_bounds = array<i64: 8, 16>}, {transform_indices = @transform_1, window_bounds = array<i64: 8, 48>}, {pipeline_mode = #tpu.pipeline_mode<synchronous>, transform_indices = @transform_2, window_bounds = array<i64: 16, 256>}, {pipeline_mode = #tpu.pipeline_mode<synchronous>, transform_indices = @transform_3, window_bounds = array<i64: 48, 256>}, {pipeline_mode = #tpu.pipeline_mode<synchronous>, transform_indices = @transform_4, window_bounds = array<i64: 1, 256>}, {pipeline_mode = #tpu.pipeline_mode<synchronous>, transform_indices = @transform_5, window_bounds = array<i64: 1, 256>}, {transform_indices = @transform_6, window_bounds = array<i64: 1, 1>}, {transform_indices = @transform_7, window_bounds = array<i64: 1, 8>}]} {
    %c0 = arith.constant 0 : index
    %c0_0 = arith.constant 0 : index
    %0 = vector.load %arg1[%c0, %c0_0] : memref<8x16xf32, #tpu.memory_space<vmem>>, vector<8x16xf32>
    %c0_1 = arith.constant 0 : index
    %c0_2 = arith.constant 0 : index
    %1 = vector.load %arg3[%c0_1, %c0_2] : memref<16x256xf32, #tpu.memory_space<vmem>>, vector<16x256xf32>
    %cst = arith.constant dense<0.000000e+00> : vector<8x256xf32>
    %2 = tpu.matmul %0, %1, %cst {dimension_numbers = #tpu.dot_dimension_numbers<[1], [0], [0], [1], [0, 0, 1, 1], [], []>} : vector<8x16xf32>, vector<16x256xf32>, vector<8x256xf32> -> vector<8x256xf32>
    %c0_3 = arith.constant 0 : index
    %c0_4 = arith.constant 0 : index
    %3 = vector.load %arg2[%c0_3, %c0_4] : memref<8x48xf32, #tpu.memory_space<vmem>>, vector<8x48xf32>
    %c0_5 = arith.constant 0 : index
    %c0_6 = arith.constant 0 : index
    %4 = vector.load %arg4[%c0_5, %c0_6] : memref<48x256xf32, #tpu.memory_space<vmem>>, vector<48x256xf32>
    %cst_7 = arith.constant dense<0.000000e+00> : vector<8x256xf32>
    %5 = tpu.matmul %3, %4, %cst_7 {dimension_numbers = #tpu.dot_dimension_numbers<[1], [0], [0], [1], [0, 0, 1, 1], [], []>} : vector<8x48xf32>, vector<48x256xf32>, vector<8x256xf32> -> vector<8x256xf32>
    %6 = arith.addf %2, %5 : vector<8x256xf32>
    %c0_8 = arith.constant 0 : index
    %c0_9 = arith.constant 0 : index
    %7 = vector.load %arg5[%c0_8, %c0_9] : memref<1x256xf32, #tpu.memory_space<vmem>>, vector<1x256xf32>
    %8 = vector.broadcast %7 : vector<1x256xf32> to vector<8x256xf32>
    %9 = arith.addf %6, %8 : vector<8x256xf32>
    %cst_10 = arith.constant 0.000000e+00 : f32
    %10 = vector.broadcast %cst_10 : f32 to vector<8x256xf32>
    %11 = arith.maximumf %9, %10 : vector<8x256xf32>
    %c0_11 = arith.constant 0 : index
    %c0_12 = arith.constant 0 : index
    %12 = vector.load %arg6[%c0_11, %c0_12] : memref<1x256xf32, #tpu.memory_space<vmem>>, vector<1x256xf32>
    %13 = vector.broadcast %12 : vector<1x256xf32> to vector<8x256xf32>
    %14 = arith.mulf %11, %13 : vector<8x256xf32>
    %cst_13 = arith.constant dense<0.000000e+00> : vector<8xf32>
    %15 = vector.multi_reduction <add>, %14, %cst_13 [1] : vector<8x256xf32> to vector<8xf32>
    %16 = vector.shape_cast %15 : vector<8xf32> to vector<1x8xf32>
    %c0_14 = arith.constant 0 : index
    %c0_15 = arith.constant 0 : index
    %17 = memref.load %arg7[%c0_14, %c0_15] : memref<1x1xf32, #tpu.memory_space<smem>>
    %18 = vector.broadcast %17 : f32 to vector<1x8xf32>
    %19 = arith.addf %16, %18 : vector<1x8xf32>
    %c0_16 = arith.constant 0 : index
    %c0_17 = arith.constant 0 : index
    %20 = vector.load %arg8[%c0_16, %c0_17] : memref<1x8xf32, #tpu.memory_space<vmem>>, vector<1x8xf32>
    tpu.vector_store %arg8[%c0_16, %c0_17], %19 {strides = array<i32>} : memref<1x8xf32, #tpu.memory_space<vmem>>, vector<1x8xf32>,
    return
  }
  func.func @transform_0(%arg0: i32) -> (i32, i32) {
    %c0_i32 = arith.constant 0 : i32
    %c0_i32_0 = arith.constant 0 : i32
    return %arg0, %c0_i32 : i32, i32
  }
  func.func @transform_1(%arg0: i32) -> (i32, i32) {
    %c0_i32 = arith.constant 0 : i32
    %c0_i32_0 = arith.constant 0 : i32
    return %arg0, %c0_i32 : i32, i32
  }
  func.func @transform_2(%arg0: i32) -> (i32, i32) {
    %c0_i32 = arith.constant 0 : i32
    %c0_i32_0 = arith.constant 0 : i32
    %c0_i32_1 = arith.constant 0 : i32
    return %c0_i32, %c0_i32_0 : i32, i32
  }
  func.func @transform_3(%arg0: i32) -> (i32, i32) {
    %c0_i32 = arith.constant 0 : i32
    %c0_i32_0 = arith.constant 0 : i32
    %c0_i32_1 = arith.constant 0 : i32
    return %c0_i32, %c0_i32_0 : i32, i32
  }
  func.func @transform_4(%arg0: i32) -> (i32, i32) {
    %c0_i32 = arith.constant 0 : i32
    %c0_i32_0 = arith.constant 0 : i32
    %c0_i32_1 = arith.constant 0 : i32
    return %c0_i32, %c0_i32_0 : i32, i32
  }
  func.func @transform_5(%arg0: i32) -> (i32, i32) {
    %c0_i32 = arith.constant 0 : i32
    %c0_i32_0 = arith.constant 0 : i32
    %c0_i32_1 = arith.constant 0 : i32
    return %c0_i32, %c0_i32_0 : i32, i32
  }
  func.func @transform_6(%arg0: i32) -> (i32, i32) {
    %c0_i32 = arith.constant 0 : i32
    %c0_i32_0 = arith.constant 0 : i32
    %c0_i32_1 = arith.constant 0 : i32
    return %c0_i32, %c0_i32_0 : i32, i32
  }
  func.func @transform_7(%arg0: i32) -> (i32, i32) {
    %c0_i32 = arith.constant 0 : i32
    %c0_i32_0 = arith.constant 0 : i32
    return %c0_i32, %arg0 : i32, i32
  }
}

</mosaic_0001>

<bundles_post_ra>
// kernel: hac_critic_forward.1
= control target key start
LH: loop header
LB: loop body
LE: loop exit
PB: predicated region body
PF: predicated region fallthrough
CT: control target
= control target key end

     0   :  { %v302_v7 = vmov 0.0   ;;  %s419_s0 = inlined_call_operand.vmem [shape: f32[8,16], index: 0, kind: input, shape index: {}]   ;;  %s420_s1 = inlined_call_operand.vmem [shape: f32[8,48], index: 1, kind: input, shape index: {}]   ;;  %s421_s2 = inlined_call_operand.vmem [shape: f32[16,256], index: 2, kind: input, shape index: {}]   ;;  %s422_s3 = inlined_call_operand.vmem [shape: f32[48,256], index: 3, kind: input, shape index: {}]   ;;  %s423_s4 = inlined_call_operand.vmem [shape: f32[1,256], index: 4, kind: input, shape index: {}]   ;;  %s424_s5 = inlined_call_operand.vmem [shape: f32[1,256], index: 5, kind: input, shape index: {}]   ;;  %s425_s6 = inlined_call_operand.<no memory space> [shape: f32[1,1], index: 6, kind: input, shape index: {}]   ;;  %s426_s7 = inlined_call_operand.hbm [shape: f32[1,8], index: 7, kind: output, shape index: {}]  }
   0x1   :  { %v35_v0 = vld [vmem:[%s422_s3 + $0x8] sm:$0xff]  ;;  %v37_v1 = vld [vmem:[%s422_s3 + $0x18] sm:$0xff]  ;;  %v34_v2 = vld [vmem:[%s422_s3] sm:$0xff]  ;;  %189 = vmatprep.mubr.f32.mxu0 %v302_v7  ;;  %114 = vmatprep.mubr.f32.mxu1 %v302_v7 }
   0x2   :  { %v258_v3 = vpack.c.bf16 %v37_v1, %v35_v0  ;;  %v36_v4 = vld [vmem:[%s422_s3 + $0x10] sm:$0xff]  ;;  %v39_v5 = vld [vmem:[%s422_s3 + $0x28] sm:$0xff]  ;;  %v41_v6 = vld [vmem:[%s422_s3 + $0x38] sm:$0xff] }
   0x3   :  { %v260_v8 = vpack.c.bf16 %v36_v4, %v34_v2  ;;  %v262_v9 = vpack.c.bf16 %v41_v6, %v39_v5  ;;  %v38_v10 = vld [vmem:[%s422_s3 + $0x20] sm:$0xff]  ;;  %v40_v11 = vld [vmem:[%s422_s3 + $0x30] sm:$0xff]  ;;  %v30_v12 = vld [vmem:[%s421_s2 + $0x8] sm:$0xff] }
   0x4   :  { %259 = vmatprep.subr.bf16.mxu1 %v258_v3  ;;  %v32_v13 = vld [vmem:[%s421_s2 + $0x18] sm:$0xff]  ;;  %v43_v14 = vld [vmem:[%s422_s3 + $0x48] sm:$0xff]  ;;  %v264_v16 = vpack.c.bf16 %v40_v11, %v38_v10  ;;  %v29_v18 = vld [vmem:[%s421_s2] sm:$0xff] }
   0x5   :  { %v45_v15 = vld [vmem:[%s422_s3 + $0x58] sm:$0xff]  ;;  %261 = vmatpush1.bf16.msra.mxu1 %v260_v8  ;;  %v270_v17 = vpack.c.bf16 %v32_v13, %v30_v12  ;;  %v31_v19 = vld [vmem:[%s421_s2 + $0x10] sm:$0xff]  ;;  %v42_v22 = vld [vmem:[%s422_s3 + $0x40] sm:$0xff] }
   0x6   :  { %263 = vmatprep.subr.bf16.mxu1 %v262_v9  ;;  %v266_v20 = vpack.c.bf16 %v45_v15, %v43_v14  ;;  %v272_v21 = vpack.c.bf16 %v31_v19, %v29_v18  ;;  %v44_v23 = vld [vmem:[%s422_s3 + $0x50] sm:$0xff] }
   0x7   :  { %271 = vmatprep.subr.bf16.mxu0 %v270_v17 }
   0x8   :  { %13 = vsyncpa [#allocation4], 0  ;;  %273 = vmatpush1.bf16.msra.mxu0 %v272_v21  ;;  %v28_v24 = vld [vmem:[%s419_s0] sm:$0xff]  ;;  %vm121_vm0 = vcmask 130048   ;;  %v268_v25 = vpack.c.bf16 %v44_v23, %v42_v22  ;;  %vm46_vm1 = vcmask 392192   ;;  %v198_v27 = vlaneseq }
   0x9   :  { %265 = vmatpush1.bf16.msra.mxu1 %v264_v16  ;;  %v33_v26 = vld [vmem:[%s420_s1] sm:$0xff]  ;;  %v230_v51 = vstv %s425_s6  ;;  %vm240_vm2 = vcmask 57344  }
   0xa   :  { %267 = vmatprep.subr.bf16.mxu1 %v266_v20  ;;  %v199_v28 = vshrl.u32 %v198_v27, 7  ;;  %v196_v31 = vld [vmem:[%s423_s4] sm:$0x3]  ;;  %v234_v50 = vand.u32 127, %v198_v27 }
   0xb   :  { %257 = vmatmul.mubr.msk.f32.vlgmr.msra.gmra.mrb[0].mxu0 %vm121_vm0, %v28_v24  ;;  %v212_v37 = vld [vmem:[%s424_s5] sm:$0x3]  ;;  %s303_s5 = smov [#allocation3]  }
   0xc   :  { %v200_v30 = vsub.s32 0, %v199_v28  ;;  %v204_v33 = vsub.s32 1, %v199_v28  ;;  %v237_v52 = vsub.s32 %v234_v50, %v199_v28  ;;  %s248_s15 = sshll.u32 %s303_s5, 4  ;;  %s249_s15 = int_to_ptr.vmem [resolvable:$true] %s248_s15 }
   0xd   :  { %269 = vmatpush1.bf16.msra.mxu1 %v268_v25  ;;  %s278_s16 = scalar_lea.vmem %s249_s15, 16  ;;  %s282_s17 = scalar_lea.vmem %s249_s15, 32 }
   0xe   :  { %v201_v34 = vrot.slane %v196_v31, %v200_v30  ;;  %v205_v36 = vrot.slane %v196_v31, %v204_v33  ;;  %v217_v42 = vrot.slane %v212_v37, %v200_v30  ;;  %v221_v44 = vrot.slane %v212_v37, %v204_v33  ;;  %p279_p0 = scmp.ne.s32.totalorder %s249_s15, %s278_s16  ;;  %p283_p1 = scmp.lt.s32.totalorder %s249_s15, %s249_s15 }
   0xf   :  { %p284_p2 = scmp.lt.s32.totalorder %s282_s17, %s278_s16 }
  0x10   :  { %256 = vmatmul.mubr.msk.f32.vlgmr.msra.gmra.mrb[0].mxu1 %vm46_vm1, %v33_v26 }
  0x11   :  { %p285_p3 = por %p284_p2, %p283_p1 }
  0x13   :  { %p286_p4 = pnand %p285_p3, %p279_p0 }
  0xde   :  { %v191_v29 = vpop.f32.mrb[0].mxu0 }
  0xdf   :  { %v193_v32 = vpop.f32.mrb[1].mxu0 }
  0xe3   :  { %v116_v35 = vpop.f32.mrb[0].mxu1 }
  0xe4   :  { %v192_v38 = vadd.f32 %v191_v29, %v116_v35  ;;  %v118_v39 = vpop.f32.mrb[1].mxu1 }
  0xe5   :  { %v194_v40 = vadd.f32 %v193_v32, %v118_v39 }
  0xe6   :  { %v208_v41 = vadd.f32 %v201_v34, %v192_v38 }
  0xe7   :  { %v209_v43 = vadd.f32 %v205_v36, %v194_v40 }
  0xe8   :  { %v210_v45 = vmax.f32 %v208_v41, 0.0 }
  0xe9   :  { %v211_v46 = vmax.f32 %v209_v43, 0.0 }
  0xea   :  { %v224_v47 = vmul.f32 %v217_v42, %v210_v45 }
  0xeb   :  { %v225_v48 = vmul.f32 %v221_v44, %v211_v46 }
  0xed   :  { %v226_v49 = vadd.f32 %v225_v48, %v224_v47 }
  0xef   :  { %227 = vadd.xlane.f32.xlu0 %v226_v49 }
 0x17c   :  { %v228_v53 = vpop.xlane.xlu0 %227 }
 0x17d   :  { %v231_v54 = vadd.f32 %v230_v51, %v228_v53 }
 0x17f   :  { %v238_v55 = vrot.slane %v231_v54, %v237_v52 }
 0x181   :  { %241 = vst.msk [vmem:[#allocation3] sm:$0x1] %vm240_vm2, %v238_v55 }
 0x182   :  { %289 = shalt.err (!%p286_p4)
}
 0x183   :  { %s290_s6 = scalar_lea.hbm %s426_s7, 16 }
 0x184   :  { %p291_p5 = scmp.ne.s32.totalorder %s426_s7, %s290_s6  ;;  %p294_p6 = scmp.lt.u32.totalorder %s290_s6, %s426_s7 }
 0x186   :  { %p296_p7 = pnand %p294_p6, %p291_p5 }
 0x188   :  { %299 = shalt.err (!%p296_p7)
}
 0x189   :  { %251 = dma.vmem_to_hbm [thread:$0]  %s249_s15, 16, %s426_s7, [#allocation4]  }
 0x18a   :  { %300 = dma.done.wait [#allocation4], 16  }
 0x18b   :  { %301 = vsyncadd [#allocation4], 4294967280 }
 0x18c   :  { %255 = vsyncpa [#allocation4], 1 }

</bundles_post_ra>
